<compile_context>
chip_gen: v7x
topology: tpu7x:2x2x1
jax: 0.10.0
libtpu: 0.0.40
codegen_flags: <defaults>
</compile_context>

<pallas_src>
import functools

import jax
import jax.numpy as jnp
from jax import lax
from jax.experimental import pallas as pl
from jax.experimental.pallas import tpu as pltpu

_LANE = 128                       # vreg lane width; pad all layer widths to this
_HIGHEST = lax.Precision.HIGHEST  # fp32 contract precision (f32 parity w/ PyTorch)


def _round_up(x, m):
    return ((x + m - 1) // m) * m


def _pad2(a, rows, cols):
    r, c = a.shape
    return jnp.pad(a, ((0, rows - r), (0, cols - c)))


def prepare_policy_params(w1, b1, w2, b2, w3, b3):
    """One-time (outside jit) zero-padding of all layer widths to 128 lanes and
    packing of the three biases into a single (3, 128) slab (one DMA)."""
    obs_dim, h1 = w1.shape
    h2 = w2.shape[1]
    act_dim = w3.shape[1]
    assert max(h1, h2, act_dim) <= _LANE, "hidden/action widths must be <= 128"
    w1p = _pad2(w1, obs_dim, _LANE)
    w2p = _pad2(w2, _LANE, _LANE)
    w3p = _pad2(w3, _LANE, _LANE)
    bp = jnp.concatenate(
        [_pad2(b1, 1, _LANE), _pad2(b2, 1, _LANE), _pad2(b3, 1, _LANE)], axis=0)
    return (w1p, w2p, w3p, bp), act_dim


# ---------------------------------------------------------------------------
# Kernel 1: fused single-state ExplorationPolicy.forward
#   mean       = tanh(MLP(state))                       (policy / crabs.policy)
#   candidates = mean + noise * decay                   (exploration candidates)
# One launch, everything VMEM-resident.
# ---------------------------------------------------------------------------
def _explore_fused_kernel(x_ref, w1_ref, w2_ref, w3_ref, b_ref,
                          noise_ref, decay_ref, mean_ref, cand_ref):
    b = b_ref[...]                                      # (3, 128) packed biases

    h = jnp.dot(x_ref[...], w1_ref[...], preferred_element_type=jnp.float32,
                precision=_HIGHEST) + b[0:1, :]
    h = jnp.maximum(h, 0.0)
    h = jnp.dot(h, w2_ref[...], preferred_element_type=jnp.float32,
                precision=_HIGHEST) + b[1:2, :]
    h = jnp.maximum(h, 0.0)
    m = jnp.tanh(jnp.dot(h, w3_ref[...], preferred_element_type=jnp.float32,
                         precision=_HIGHEST) + b[2:3, :])        # (8, 128)

    mean_ref[...] = m.astype(mean_ref.dtype)
    # row 0 is the real state; rows 1..7 are zero-padding.
    cand_ref[...] = (m[0:1, :] + noise_ref[...] * decay_ref[...]
                     ).astype(cand_ref.dtype)


@functools.partial(jax.jit, static_argnames=("act_dim", "n"))
def exploration_policy_forward(states, w1p, w2p, w3p, bp, key, *, act_dim, n=100):
    """ExplorationPolicy.forward for a single state (states: (1, obs_dim))."""
    assert states.shape[0] == 1
    obs_dim = states.shape[1]

    # Pad the single state to 8 sublanes (rows 1..7 are ignored).
    states_p = jnp.pad(states, ((0, 8 - states.shape[0]), (0, 0)))

    # n noisy candidates with log-spaced decaying exploration noise.
    decay = jnp.logspace(0.0, -3.0, n, dtype=jnp.float32)[:, None]    # (n, 1)
    noise = jax.random.normal(key, (n, act_dim), dtype=jnp.float32)
    noise_p = jnp.pad(noise, ((0, 0), (0, _LANE - act_dim)))          # lane-dense

    vmem = pl.BlockSpec(memory_space=pltpu.MemorySpace.VMEM)
    mean_p, cand_p = pl.pallas_call(
        _explore_fused_kernel,
        out_shape=(jax.ShapeDtypeStruct((8, _LANE), jnp.float32),
                   jax.ShapeDtypeStruct((n, _LANE), jnp.float32)),
        in_specs=[vmem] * 7,
        out_specs=(vmem, vmem),
    )(states_p, w1p, w2p, w3p, bp, noise_p, decay)

    mean = mean_p[0:1, :act_dim]           # == self.policy(states) (deterministic)
    candidates = cand_p[:, :act_dim]

    # TODO(synk): crabs.u(states.repeat(n,1), candidates) barrier check and
    # first-safe-index selection require CrabsCore (not provided); follow the
    # `else` branch: return the policy action for states[0].
    action = mean
    return action, candidates


# ---------------------------------------------------------------------------
# Kernel 2: batched deterministic policy MLP (the `self.policy(states)` /
# `self.crabs.policy(...)` path):  Linear-ReLU-Linear-ReLU-Linear-Tanh.
# One grid step processes a (TM, obs_dim) batch tile; weights stay resident.
# ---------------------------------------------------------------------------
def _policy_mlp_kernel(x_ref, w1_ref, w2_ref, w3_ref, b_ref, o_ref):
    x = x_ref[...]
    b = b_ref[...]                                       # (3, 128) packed biases

    h = jnp.dot(x, w1_ref[...], preferred_element_type=jnp.float32,
                precision=_HIGHEST) + b[0:1, :]
    h = jnp.maximum(h, 0.0)
    h = jnp.dot(h, w2_ref[...], preferred_element_type=jnp.float32,
                precision=_HIGHEST) + b[1:2, :]
    h = jnp.maximum(h, 0.0)
    h = jnp.dot(h, w3_ref[...], preferred_element_type=jnp.float32,
                precision=_HIGHEST) + b[2:3, :]
    o_ref[...] = jnp.tanh(h).astype(o_ref.dtype)


def _choose_tiling(batch):
    """Pick (tm, padded_batch): bounded padding waste, >=2 even grid steps for
    batch > 64 (keeps both v7x TensorCores busy; no-op on v5e/v6e), tiles capped
    at 1024 rows to amortize per-step overhead without VMEM pressure."""
    if batch <= 64:
        tm = _round_up(max(batch, 1), 8)
        return tm, tm
    num_tiles = max(2, -(-batch // 1024))
    if num_tiles % 2:
        num_tiles += 1
    tm = _round_up(-(-batch // num_tiles), 8)
    return tm, tm * num_tiles


@functools.partial(jax.jit, static_argnames=("act_dim",))
def policy_predict(obs, w1p, w2p, w3p, bp, *, act_dim):
    """Deterministic policy: action = tanh(MLP(obs)). obs: (batch, obs_dim)."""
    batch, obs_dim = obs.shape
    tm, padded_batch = _choose_tiling(batch)
    obs_p = jnp.pad(obs, ((0, padded_batch - batch), (0, 0)))

    out = pl.pallas_call(
        _policy_mlp_kernel,
        out_shape=jax.ShapeDtypeStruct((padded_batch, _LANE), jnp.float32),
        grid=(padded_batch // tm,),
        in_specs=[
            pl.BlockSpec((tm, obs_dim), lambda i: (i, 0)),      # obs: streamed
            pl.BlockSpec((obs_dim, _LANE), lambda i: (0, 0)),   # w1: resident
            pl.BlockSpec((_LANE, _LANE), lambda i: (0, 0)),     # w2: resident
            pl.BlockSpec((_LANE, _LANE), lambda i: (0, 0)),     # w3: resident
            pl.BlockSpec((3, _LANE), lambda i: (0, 0)),         # packed biases
        ],
        out_specs=pl.BlockSpec((tm, _LANE), lambda i: (i, 0)),
        compiler_params=pltpu.CompilerParams(
            dimension_semantics=("parallel",)),
    )(obs_p, w1p, w2p, w3p, bp)
    return out[:batch, :act_dim]


# ---------------------------------------------------------------------------
# Parameter init (mirrors omnisafe build_mlp_network kaiming_uniform init)
# and pure-JAX reference.
# ---------------------------------------------------------------------------
def _kaiming_uniform(key, fan_in, fan_out, a=5.0 ** 0.5):
    gain = (2.0 / (1.0 + a * a)) ** 0.5
    bound = gain * (3.0 / fan_in) ** 0.5
    return jax.random.uniform(key, (fan_in, fan_out), jnp.float32,
                              minval=-bound, maxval=bound)


def _bias_init(key, fan_in, fan_out):
    bound = 1.0 / (fan_in ** 0.5)
    return jax.random.uniform(key, (1, fan_out), jnp.float32,
                              minval=-bound, maxval=bound)


def make_params(key, sizes):
    params = []
    for j in range(len(sizes) - 1):
        key, kw, kb = jax.random.split(key, 3)
        params.append(_kaiming_uniform(kw, sizes[j], sizes[j + 1]))
        params.append(_bias_init(kb, sizes[j], sizes[j + 1]))
    return params


def reference_policy(obs, w1, b1, w2, b2, w3, b3):
    h = jnp.maximum(jnp.dot(obs, w1, precision=_HIGHEST) + b1, 0.0)
    h = jnp.maximum(jnp.dot(h, w2, precision=_HIGHEST) + b2, 0.0)
    return jnp.tanh(jnp.dot(h, w3, precision=_HIGHEST) + b3)


if __name__ == "__main__":
    obs_dim, hidden, act_dim = 16, [32, 32], 8
    sizes = [obs_dim, *hidden, act_dim]

    root = jax.random.PRNGKey(0)
    k_params, k_state, k_noise, k_batch = jax.random.split(root, 4)
    states = jax.random.normal(k_state, (1, obs_dim), dtype=jnp.float32)
    raw_params = make_params(k_params, sizes)
    (w1p, w2p, w3p, bp), ad = prepare_policy_params(*raw_params)

    # --- ExplorationPolicy.forward on a single state (one fused launch) -----
    n = 100
    action, candidates = exploration_policy_forward(
        states, w1p, w2p, w3p, bp, k_noise, act_dim=ad, n=n)
    jax.block_until_ready((action, candidates))

    mean_ref = reference_policy(states, *raw_params)
    decay_ref = jnp.logspace(0.0, -3.0, n, dtype=jnp.float32)[:, None]
    noise_ref = jax.random.normal(k_noise, (n, act_dim), dtype=jnp.float32)
    cand_ref = mean_ref + noise_ref * decay_ref

    # Tolerance covers the in-kernel EUP tanh approximation vs XLA's tanh.
    assert action.shape == (1, act_dim)
    assert candidates.shape == (n, act_dim)
    assert jnp.allclose(action, mean_ref, atol=1e-4, rtol=1e-4), "policy mismatch"
    assert jnp.allclose(candidates, cand_ref, atol=1e-4, rtol=1e-4), "candidate mismatch"
    assert bool(jnp.all(jnp.abs(action) <= 1.0)), "tanh output out of range"

    # --- batched policy path (exercises the parallel grid + bounded padding) -
    big_obs = jax.random.normal(k_batch, (520, obs_dim), dtype=jnp.float32)
    out_big = jax.block_until_ready(
        policy_predict(big_obs, w1p, w2p, w3p, bp, act_dim=ad))
    ref_big = reference_policy(big_obs, *raw_params)
    assert out_big.shape == (520, act_dim)
    assert jnp.allclose(out_big, ref_big, atol=1e-4, rtol=1e-4), "batched mismatch"

    print("KERNEL_OK")
</pallas_src>

<mosaic_0001>
module attributes {stable_mosaic.version = 11 : i64} {
  func.func @_explore_fused_kernel(%arg0: memref<8x16xf32, #tpu.memory_space<vmem>>, %arg1: memref<16x128xf32, #tpu.memory_space<vmem>>, %arg2: memref<128x128xf32, #tpu.memory_space<vmem>>, %arg3: memref<128x128xf32, #tpu.memory_space<vmem>>, %arg4: memref<3x128xf32, #tpu.memory_space<vmem>>, %arg5: memref<100x128xf32, #tpu.memory_space<vmem>>, %arg6: memref<100x1xf32, #tpu.memory_space<vmem>>, %arg7: memref<8x128xf32, #tpu.memory_space<vmem>>, %arg8: memref<100x128xf32, #tpu.memory_space<vmem>>) attributes {dimension_semantics = [], scalar_prefetch = 0 : i64, scratch_operands = 0 : i64, tpu.core_type = #tpu.core_type<tc>} {
    %c0 = arith.constant 0 : index
    %c0_0 = arith.constant 0 : index
    %0 = vector.load %arg4[%c0, %c0_0] : memref<3x128xf32, #tpu.memory_space<vmem>>, vector<3x128xf32>
    %c0_1 = arith.constant 0 : index
    %c0_2 = arith.constant 0 : index
    %1 = vector.load %arg0[%c0_1, %c0_2] : memref<8x16xf32, #tpu.memory_space<vmem>>, vector<8x16xf32>
    %c0_3 = arith.constant 0 : index
    %c0_4 = arith.constant 0 : index
    %2 = vector.load %arg1[%c0_3, %c0_4] : memref<16x128xf32, #tpu.memory_space<vmem>>, vector<16x128xf32>
    %cst = arith.constant dense<0.000000e+00> : vector<8x128xf32>
    %3 = tpu.matmul %1, %2, %cst {dimension_numbers = #tpu.dot_dimension_numbers<[1], [0], [0], [1], [0, 0, 1, 1], [], []>, precision = #tpu.contract_precision<fp32>} : vector<8x16xf32>, vector<16x128xf32>, vector<8x128xf32> -> vector<8x128xf32>
    %4 = vector.extract_strided_slice %0 {offsets = [0, 0], sizes = [1, 128], strides = [1, 1]} : vector<3x128xf32> to vector<1x128xf32>
    %5 = vector.broadcast %4 : vector<1x128xf32> to vector<8x128xf32>
    %6 = arith.addf %3, %5 : vector<8x128xf32>
    %cst_5 = arith.constant 0.000000e+00 : f32
    %7 = vector.broadcast %cst_5 : f32 to vector<8x128xf32>
    %8 = arith.maximumf %6, %7 : vector<8x128xf32>
    %c0_6 = arith.constant 0 : index
    %c0_7 = arith.constant 0 : index
    %9 = vector.load %arg2[%c0_6, %c0_7] : memref<128x128xf32, #tpu.memory_space<vmem>>, vector<128x128xf32>
    %cst_8 = arith.constant dense<0.000000e+00> : vector<8x128xf32>
    %10 = tpu.matmul %8, %9, %cst_8 {dimension_numbers = #tpu.dot_dimension_numbers<[1], [0], [0], [1], [0, 0, 1, 1], [], []>, precision = #tpu.contract_precision<fp32>} : vector<8x128xf32>, vector<128x128xf32>, vector<8x128xf32> -> vector<8x128xf32>
    %11 = vector.extract_strided_slice %0 {offsets = [1, 0], sizes = [1, 128], strides = [1, 1]} : vector<3x128xf32> to vector<1x128xf32>
    %12 = vector.broadcast %11 : vector<1x128xf32> to vector<8x128xf32>
    %13 = arith.addf %10, %12 : vector<8x128xf32>
    %cst_9 = arith.constant 0.000000e+00 : f32
    %14 = vector.broadcast %cst_9 : f32 to vector<8x128xf32>
    %15 = arith.maximumf %13, %14 : vector<8x128xf32>
    %c0_10 = arith.constant 0 : index
    %c0_11 = arith.constant 0 : index
    %16 = vector.load %arg3[%c0_10, %c0_11] : memref<128x128xf32, #tpu.memory_space<vmem>>, vector<128x128xf32>
    %cst_12 = arith.constant dense<0.000000e+00> : vector<8x128xf32>
    %17 = tpu.matmul %15, %16, %cst_12 {dimension_numbers = #tpu.dot_dimension_numbers<[1], [0], [0], [1], [0, 0, 1, 1], [], []>, precision = #tpu.contract_precision<fp32>} : vector<8x128xf32>, vector<128x128xf32>, vector<8x128xf32> -> vector<8x128xf32>
    %18 = vector.extract_strided_slice %0 {offsets = [2, 0], sizes = [1, 128], strides = [1, 1]} : vector<3x128xf32> to vector<1x128xf32>
    %19 = vector.broadcast %18 : vector<1x128xf32> to vector<8x128xf32>
    %20 = arith.addf %17, %19 : vector<8x128xf32>
    %21 = math.tanh %20 : vector<8x128xf32>
    %c0_13 = arith.constant 0 : index
    %c0_14 = arith.constant 0 : index
    %22 = vector.load %arg7[%c0_13, %c0_14] : memref<8x128xf32, #tpu.memory_space<vmem>>, vector<8x128xf32>
    tpu.vector_store %arg7[%c0_13, %c0_14], %21 {strides = array<i32>} : memref<8x128xf32, #tpu.memory_space<vmem>>, vector<8x128xf32>,
    %23 = vector.extract_strided_slice %21 {offsets = [0, 0], sizes = [1, 128], strides = [1, 1]} : vector<8x128xf32> to vector<1x128xf32>
    %c0_15 = arith.constant 0 : index
    %c0_16 = arith.constant 0 : index
    %24 = vector.load %arg5[%c0_15, %c0_16] : memref<100x128xf32, #tpu.memory_space<vmem>>, vector<100x128xf32>
    %c0_17 = arith.constant 0 : index
    %c0_18 = arith.constant 0 : index
    %25 = vector.load %arg6[%c0_17, %c0_18] : memref<100x1xf32, #tpu.memory_space<vmem>>, vector<100x1xf32>
    %26 = vector.broadcast %25 : vector<100x1xf32> to vector<100x128xf32>
    %27 = arith.mulf %24, %26 : vector<100x128xf32>
    %28 = vector.broadcast %23 : vector<1x128xf32> to vector<100x128xf32>
    %29 = arith.addf %28, %27 : vector<100x128xf32>
    %c0_19 = arith.constant 0 : index
    %c0_20 = arith.constant 0 : index
    %30 = vector.load %arg8[%c0_19, %c0_20] : memref<100x128xf32, #tpu.memory_space<vmem>>, vector<100x128xf32>
    tpu.vector_store %arg8[%c0_19, %c0_20], %29 {strides = array<i32>} : memref<100x128xf32, #tpu.memory_space<vmem>>, vector<100x128xf32>,
    return
  }
}

</mosaic_0001>

<bundles_post_ra>
// kernel: exploration_policy_forward.1
= control target key start
LH: loop header
LB: loop body
LE: loop exit
PB: predicated region body
PF: predicated region fallthrough
CT: control target
= control target key end

     0   :  { %vm36_vm0 = vcmask 130048   ;;  %v2997_v0 = vmov 0.0|0.0   ;;  %vm2998_vm1 = vmmov 0   ;;  %v2999_v3 = vmov 0.0   ;;  %s3869_s1 = inlined_call_operand.vmem [shape: f32[16,128], index: 1, kind: input, shape index: {}]   ;;  %s3870_s0 = inlined_call_operand.vmem [shape: f32[8,16], index: 0, kind: input, shape index: {}]   ;;  %s3871_s2 = inlined_call_operand.vmem [shape: f32[128,128], index: 2, kind: input, shape index: {}]   ;;  %s3872_s4 = inlined_call_operand.vmem [shape: f32[3,128], index: 4, kind: input, shape index: {}]   ;;  %s3873_s3 = inlined_call_operand.vmem [shape: f32[128,128], index: 3, kind: input, shape index: {}]   ;;  %s3874_s6 = inlined_call_operand.vmem [shape: f32[100,1], index: 6, kind: input, shape index: {}]   ;;  %s3875_s5 = inlined_call_operand.vmem [shape: f32[100,128], index: 5, kind: input, shape index: {}]   ;;  %s3876_s7 = inlined_call_operand.vmem [shape: f32[8,128], index: 7, kind: output, shape index: {0}]   ;;  %s3877_s8 = inlined_call_operand.vmem [shape: f32[100,128], index: 8, kind: output, shape index: {1}]  }
   0x1   :  { %2660 = vmatprep.subr.bf16.mxu0 %v2997_v0  ;;  %v30_v1 = vld [vmem:[%s3869_s1] sm:$0xff]  ;;  %v31_v2 = vld [vmem:[%s3869_s1 + $0x8] sm:$0xff]  ;;  %2214 = vmatprep.mubr.msk.f32.mxu0 %vm2998_vm1, %v2999_v3  ;;  %v502_v10 = vld [vmem:[%s3871_s2 + $0x10] sm:$0xff] }
   0x2   :  { %v29_v4 = vld [vmem:[%s3870_s0] sm:$0xff]  ;;  %v41_v5 = vand.u32 4294901760, %v30_v1  ;;  %v44_v6 = vand.u32 4294901760, %v31_v2  ;;  %2651 = vmatprep.subr.bf16.mxu1 %v2997_v0  ;;  %2193 = vmatprep.mubr.msk.f32.mxu1 %vm2998_vm1, %v2999_v3  ;;  %v501_v9 = vld [vmem:[%s3871_s2 + $0x8] sm:$0xff]  ;;  %v503_v14 = vld [vmem:[%s3871_s2 + $0x18] sm:$0xff]  ;;  %v527_v18 = vand.u32 4294901760, %v502_v10 }
   0x3   :  { %v38_v7 = vsel %vm36_vm0, %v29_v4, 0  ;;  %v500_v8 = vld [vmem:[%s3871_s2] sm:$0xff]  ;;  %v524_v13 = vand.u32 4294901760, %v501_v9  ;;  %v530_v23 = vand.u32 4294901760, %v503_v14  ;;  %v505_v24 = vld [vmem:[%s3871_s2 + $0x28] sm:$0xff]  ;;  %v506_v46 = vld [vmem:[%s3871_s2 + $0x30] sm:$0xff] }
   0x4   :  { %v107_v11 = vand.u32 4294901760, %v38_v7  ;;  %v521_v12 = vand.u32 4294901760, %v500_v8  ;;  %v2652_v15 = vpack.c.bf16 %v44_v6, %v41_v5  ;;  %v119_v16 = vsub.f32 %v30_v1, %v41_v5  ;;  %v504_v19 = vld [vmem:[%s3871_s2 + $0x20] sm:$0xff]  ;;  %v507_v47 = vld [vmem:[%s3871_s2 + $0x38] sm:$0xff]  ;;  %v509_v52 = vld [vmem:[%s3871_s2 + $0x48] sm:$0xff] }
   0x5   :  { %v126_v17 = vsub.f32 %v31_v2, %v44_v6  ;;  %v3078_v22 = vsub.f32 %v501_v9, %v524_v13  ;;  %v3085_v28 = vsub.f32 %v502_v10, %v527_v18  ;;  %v3087_v29 = vsub.f32 %v503_v14, %v530_v23  ;;  %v508_v51 = vld [vmem:[%s3871_s2 + $0x40] sm:$0xff]  ;;  %v510_v58 = vld [vmem:[%s3871_s2 + $0x50] sm:$0xff]  ;;  %v511_v59 = vld [vmem:[%s3871_s2 + $0x58] sm:$0xff] }
   0x6   :  { %v108_v20 = vsub.f32 %v38_v7, %v107_v11  ;;  %v3076_v21 = vsub.f32 %v500_v8, %v521_v12  ;;  %2662 = vmatpush3.bf16.msra.mxu0 %v2652_v15  ;;  %2653 = vmatpush3.bf16.msra.mxu1 %v2652_v15  ;;  %v120_v25 = vand.u32 4294901760, %v119_v16  ;;  %v533_v30 = vand.u32 4294901760, %v504_v19  ;;  %v512_v63 = vld [vmem:[%s3871_s2 + $0x60] sm:$0xff]  ;;  %v513_v1 = vld [vmem:[%s3871_s2 + $0x68] sm:$0xff]  ;;  %v514_v6 = vld [vmem:[%s3871_s2 + $0x70] sm:$0xff] }
   0x7   :  { %v127_v26 = vand.u32 4294901760, %v126_v17  ;;  %2654 = vmatprep.subr.bf16.mxu1 %v2997_v0  ;;  %2663 = vmatprep.subr.bf16.mxu0 %v2997_v0  ;;  %v536_v34 = vand.u32 4294901760, %v505_v24  ;;  %v2658_v42 = vpack.c.bf16 %v126_v17, %v119_v16  ;;  %v3105_v43 = vpack.c.bf16 %v524_v13, %v521_v12  ;;  %v515_v7 = vld [vmem:[%s3871_s2 + $0x78] sm:$0xff] }
   0x8   :  { %v109_v27 = vand.u32 4294901760, %v108_v20  ;;  %v121_v31 = vsub.f32 %v119_v16, %v120_v25  ;;  %v3089_v36 = vsub.f32 %v504_v19, %v533_v30  ;;  %v3110_v44 = vpack.c.bf16 %v530_v23, %v527_v18 }
   0x9   :  { %v128_v32 = vsub.f32 %v126_v17, %v127_v26  ;;  %v2664_v33 = vpack.c.bf16 %v127_v26, %v120_v25  ;;  %v3093_v39 = vsub.f32 %v505_v24, %v536_v34  ;;  %v3116_v45 = vpack.c.bf16 %v536_v34, %v533_v30 }
   0xa   :  { %2215 = vmatmul.mubr.f32.vlgmr.msra.gmra.mrb[0].mxu0 %v109_v27  ;;  %v110_v35 = vsub.f32 %v108_v20, %v109_v27  ;;  %v122_v37 = vand.u32 4294901760, %v121_v31  ;;  %v539_v48 = vand.u32 4294901760, %v506_v46  ;;  %v542_v49 = vand.u32 4294901760, %v507_v47 }
   0xb   :  { %v129_v38 = vand.u32 4294901760, %v128_v32  ;;  %2665 = vmatpush3.bf16.msra.mxu0 %v2664_v33  ;;  %2221 = vmatprep.mubr.msk.f32.mxu0 %vm2998_vm1, %v2999_v3  ;;  %v545_v55 = vand.u32 4294901760, %v508_v51  ;;  %v548_v56 = vand.u32 4294901760, %v509_v52  ;;  %v551_v60 = vand.u32 4294901760, %v510_v58 }
   0xc   :  { %v111_v40 = vand.u32 4294901760, %v110_v35  ;;  %2666 = vmatprep.subr.bf16.mxu0 %v2997_v0  ;;  %v3127_v50 = vpack.c.bf16 %v542_v49, %v539_v48  ;;  %v3136_v53 = vsub.f32 %v506_v46, %v539_v48  ;;  %v3138_v54 = vsub.f32 %v507_v47, %v542_v49 }
   0xd   :  { %v2655_v41 = vpack.c.bf16 %v129_v38, %v122_v37  ;;  %v3141_v57 = vpack.c.bf16 %v548_v56, %v545_v55  ;;  %v554_v61 = vand.u32 4294901760, %v511_v59  ;;  %v557_v2 = vand.u32 4294901760, %v512_v63 }
   0xe   :  { %2194 = vmatmul.mubr.f32.vlgmr.msra.gmra.mrb[0].mxu1 %v111_v40  ;;  %v560_v4 = vand.u32 4294901760, %v513_v1  ;;  %v563_v8 = vand.u32 4294901760, %v514_v6  ;;  %v566_v9 = vand.u32 4294901760, %v515_v7  ;;  %v614_v10 = vand.u32 4294901760, %v3076_v21 }
   0xf   :  { %2656 = vmatpush3.bf16.msra.mxu1 %v2655_v41  ;;  %2200 = vmatprep.mubr.msk.f32.mxu1 %vm2998_vm1, %v2999_v3  ;;  %v3151_v62 = vpack.c.bf16 %v554_v61, %v551_v60  ;;  %v3172_v12 = vsub.f32 %v508_v51, %v545_v55  ;;  %v3174_v13 = vsub.f32 %v509_v52, %v548_v56  ;;  %v3892_v25 = vand.u32 4294901760, %v3085_v28 }
  0x10   :  { %2657 = vmatprep.subr.bf16.mxu1 %v2997_v0  ;;  %v3161_v5 = vpack.c.bf16 %v560_v4, %v557_v2  ;;  %v3176_v14 = vsub.f32 %v510_v58, %v551_v60  ;;  %v3181_v16 = vsub.f32 %v512_v63, %v557_v2  ;;  %v3183_v17 = vsub.f32 %v513_v1, %v560_v4 }
  0x11   :  { %v3185_v18 = vpack.c.bf16 %v566_v9, %v563_v8  ;;  %v3187_v19 = vsub.f32 %v514_v6, %v563_v8  ;;  %v615_v23 = vsub.f32 %v3076_v21, %v614_v10  ;;  %v3891_v26 = vand.u32 4294901760, %v3087_v29 }
  0x12   :  { %2222 = vmatmul.mubr.f32.vlgmr.msra.gmra.mrb[0].mxu0 %v107_v11  ;;  %v629_v31 = vsub.f32 %v3085_v28, %v3892_v25  ;;  %v3890_v37 = vand.u32 4294901760, %v3089_v36  ;;  %v3889_v38 = vand.u32 4294901760, %v3093_v39  ;;  %v3888_v48 = vand.u32 4294901760, %v3136_v53 }
  0x13   :  { %2668 = vmatpush3.bf16.msra.mxu0 %v2652_v15  ;;  %2228 = vmatprep.mubr.msk.f32.mxu0 %vm2998_vm1, %v2999_v3  ;;  %v3178_v15 = vsub.f32 %v511_v59, %v554_v61  ;;  %v616_v27 = vand.u32 4294901760, %v615_v23  ;;  %v636_v32 = vsub.f32 %v3087_v29, %v3891_v26  ;;  %v3886_v49 = vand.u32 4294901760, %v3138_v54 }
  0x14   :  { %2813 = vmatprep.subr.bf16.mxu0 %v2997_v0  ;;  %v630_v34 = vand.u32 4294901760, %v629_v31  ;;  %v643_v41 = vsub.f32 %v3089_v36, %v3890_v37  ;;  %v657_v52 = vsub.f32 %v3136_v53, %v3888_v48  ;;  %v3885_v59 = vand.u32 4294901760, %v3172_v12  ;;  %v1171_v48 = vld [vmem:[%s3873_s3 + $0x48] sm:$0xff] }
  0x15   :  { %v637_v35 = vand.u32 4294901760, %v636_v32  ;;  %v664_v55 = vsub.f32 %v3138_v54, %v3886_v49  ;;  %v3884_v60 = vand.u32 4294901760, %v3174_v13  ;;  %v3883_v6 = vand.u32 4294901760, %v3176_v14 }
  0x16   :  { %2201 = vmatmul.mubr.f32.vlgmr.msra.gmra.mrb[0].mxu1 %v107_v11  ;;  %v644_v46 = vand.u32 4294901760, %v643_v41  ;;  %v658_v56 = vand.u32 4294901760, %v657_v52  ;;  %v671_v63 = vsub.f32 %v3172_v12, %v3885_v59  ;;  %v3880_v31 = vand.u32 4294901760, %v3183_v17 }
  0x17   :  { %2659 = vmatpush3.bf16.msra.mxu1 %v2658_v42  ;;  %2207 = vmatprep.mubr.msk.f32.mxu1 %vm2998_vm1, %v2999_v3  ;;  %v3211_v40 = vpack.c.bf16 %v637_v35, %v630_v34  ;;  %v650_v42 = vsub.f32 %v3093_v39, %v3889_v38  ;;  %v665_v58 = vand.u32 4294901760, %v664_v55  ;;  %v678_v1 = vsub.f32 %v3174_v13, %v3884_v60 }
  0x18   :  { %2669 = vmatprep.subr.bf16.mxu1 %v2997_v0  ;;  %v672_v2 = vand.u32 4294901760, %v671_v63  ;;  %v706_v35 = vsub.f32 %v3183_v17, %v3880_v31 }
  0x19   :  { %v651_v47 = vand.u32 4294901760, %v650_v42  ;;  %v2703_v61 = vpack.c.bf16 %v665_v58, %v658_v56  ;;  %v679_v4 = vand.u32 4294901760, %v678_v1 }
  0x1a   :  { %2229 = vmatmul.mubr.f32.vlgmr.msra.gmra.mrb[0].mxu0 %v107_v11  ;;  %v621_v11 = vand.u32 4294901760, %v3078_v22  ;;  %v707_v42 = vand.u32 4294901760, %v706_v35 }
  0x1b   :  { %2473 = vmatprep.mubr.msk.f32.mxu0 %vm2998_vm1, %v2999_v3  ;;  %v3221_v51 = vpack.c.bf16 %v651_v47, %v644_v46  ;;  %v2706_v8 = vpack.c.bf16 %v679_v4, %v672_v2  ;;  %v3879_v46 = vand.u32 4294901760, %v3187_v19  ;;  %v2718_v2 = vpack.c.bf16 %v3078_v22, %v3076_v21 }
  0x1c   :  { %v622_v24 = vsub.f32 %v3078_v22, %v621_v11  ;;  %v2721_v4 = vpack.c.bf16 %v3087_v29, %v3085_v28  ;;  %v3902_v21 = vand.u32 4294901760, %v3089_v36  ;;  %v3903_v22 = vand.u32 4294901760, %v3093_v39 }
  0x1d   :  { %v713_v55 = vsub.f32 %v3187_v19, %v3879_v46 }
  0x1e   :  { %2208 = vmatmul.mubr.f32.vlgmr.msra.gmra.mrb[0].mxu1 %v108_v20  ;;  %v3189_v20 = vsub.f32 %v515_v7, %v566_v9  ;;  %v623_v30 = vand.u32 4294901760, %v622_v24  ;;  %v3882_v7 = vand.u32 4294901760, %v3178_v15  ;;  %v685_v9 = vsub.f32 %v3176_v14, %v3883_v6 }
  0x1f   :  { %2671 = vmatpush3.bf16.msra.mxu1 %v3105_v43  ;;  %2263 = vmatprep.mubr.msk.f32.mxu1 %vm2998_vm1, %v2999_v3  ;;  %v714_v58 = vand.u32 4294901760, %v713_v55 }
  0x20   :  { %2672 = vmatprep.subr.bf16.mxu1 %v2997_v0  ;;  %v3207_v33 = vpack.c.bf16 %v623_v30, %v616_v27  ;;  %v692_v23 = vsub.f32 %v3178_v15, %v3882_v7  ;;  %v686_v24 = vand.u32 4294901760, %v685_v9  ;;  %v3881_v30 = vand.u32 4294901760, %v3181_v16 }
  0x21   :  { %v3878_v47 = vand.u32 4294901760, %v3189_v20  ;;  %v2724_v9 = vpack.c.bf16 %v3093_v39, %v3089_v36  ;;  %v2739_v35 = vpack.c.bf16 %v3189_v20, %v3187_v19  ;;  %v3908_v36 = vand.u32 4294901760, %v3176_v14 }
  0x22   :  { %v693_v27 = vand.u32 4294901760, %v692_v23  ;;  %v699_v34 = vsub.f32 %v3181_v16, %v3881_v30  ;;  %v2727_v23 = vpack.c.bf16 %v3138_v54, %v3136_v53  ;;  %v3909_v39 = vand.u32 4294901760, %v3178_v15 }
  0x23   :  { %2674 = vmatpush3.bf16.msra.mxu1 %v3110_v44  ;;  %v720_v56 = vsub.f32 %v3189_v20, %v3878_v47 }
  0x24   :  { %2675 = vmatprep.subr.bf16.mxu1 %v2997_v0  ;;  %v2709_v32 = vpack.c.bf16 %v693_v27, %v686_v24  ;;  %v700_v41 = vand.u32 4294901760, %v699_v34  ;;  %v2730_v24 = vpack.c.bf16 %v3174_v13, %v3172_v12  ;;  %v2733_v27 = vpack.c.bf16 %v3178_v15, %v3176_v14 }
  0x25   :  { %v721_v63 = vand.u32 4294901760, %v720_v56  ;;  %v2736_v34 = vpack.c.bf16 %v3183_v17, %v3181_v16  ;;  %v3283_v56 = vld [vmem:[%s3872_s4] sm:$0x7] }
  0x26   :  { %v2712_v52 = vpack.c.bf16 %v707_v42, %v700_v41  ;;  %v32_v41 = vlaneseq }
  0x27   :  { %2677 = vmatpush3.bf16.msra.mxu1 %v3116_v45  ;;  %v2715_v1 = vpack.c.bf16 %v721_v63, %v714_v58 }
  0x28   :  { %2678 = vmatprep.subr.bf16.mxu1 %v2997_v0  ;;  %v3277_v42 = vshrl.u32 %v32_v41, 7 }
  0x2a   :  { %v3887_v55 = vsub.s32 0, %v3277_v42 }
  0x2b   :  { %2680 = vmatpush3.bf16.msra.mxu1 %v3127_v50 }
  0x2c   :  { %2681 = vmatprep.subr.bf16.mxu1 %v2997_v0  ;;  %v35_v47 = vrot.slane %v3283_v56, %v3887_v55 }
  0x2f   :  { %2683 = vmatpush3.bf16.msra.mxu1 %v3141_v57 }
  0x30   :  { %2684 = vmatprep.subr.bf16.mxu1 %v2997_v0 }
  0x33   :  { %2686 = vmatpush3.bf16.msra.mxu1 %v3151_v62 }
  0x34   :  { %2687 = vmatprep.subr.bf16.mxu1 %v2997_v0 }
  0x37   :  { %2689 = vmatpush3.bf16.msra.mxu1 %v3161_v5 }
  0x38   :  { %2690 = vmatprep.subr.bf16.mxu1 %v2997_v0 }
  0x3b   :  { %2692 = vmatpush3.bf16.msra.mxu1 %v3185_v18 }
  0x3c   :  { %2693 = vmatprep.subr.bf16.mxu1 %v2997_v0 }
  0xed   :  { %v495_v58 = vpop.f32.mrb[0].mxu0 }
  0xee   :  { %v2230_v63 = vpop.f32.mrb[1].mxu0 }
  0xf1   :  { %v270_v46 = vpop.f32.mrb[0].mxu1 }
  0xf2   :  { %v2957_v31 = vadd.f32 %v270_v46, %v35_v47  ;;  %v2209_v30 = vpop.f32.mrb[1].mxu1  ;;  %v1168_v47 = vld [vmem:[%s3873_s3 + $0x30] sm:$0xff] }
  0xf3   :  { %v1167_v30 = vld [vmem:[%s3873_s3 + $0x28] sm:$0xff] }
  0xf4   :  { %v2958_v7 = vadd.f32 %v2957_v31, %v495_v58  ;;  %v1198_v46 = vand.u32 4294901760, %v1167_v30 }
  0xf6   :  { %v499_v6 = vmax.f32 %v2958_v7, 0.0 }
  0xf8   :  { %v3288_v41 = vand.u32 4294901760, %v499_v6 }
  0xfa   :  { %v3291_v60 = vsub.f32 %v499_v6, %v3288_v41  ;;  %v1165_v6 = vld [vmem:[%s3873_s3 + $0x18] sm:$0xff] }
  0xfb   :  { %v1192_v31 = vand.u32 4294901760, %v1165_v6 }
  0xfc   :  { %v603_v59 = vand.u32 4294901760, %v3291_v60 }
  0xfd   :  { %v3357_v37 = vsub.f32 %v1165_v6, %v1192_v31 }
  0xfe   :  { %v604_v63 = vsub.f32 %v3291_v60, %v603_v59 }
 0x100   :  { %v605_v49 = vand.u32 4294901760, %v604_v63 }
 0x102   :  { %2264 = vmatmul.mubr.f32.vlgmr.msra.gmra.mrb[2].mxu1 %v605_v49  ;;  %v1164_v49 = vld [vmem:[%s3873_s3 + $0x10] sm:$0xff] }
 0x103   :  { %2695 = vmatpush3.bf16.msra.mxu1 %v3207_v33  ;;  %2298 = vmatprep.mubr.msk.f32.mxu1 %vm2998_vm1, %v2999_v3  ;;  %v1162_v33 = vld [vmem:[%s3873_s3] sm:$0xff]  ;;  %v1189_v7 = vand.u32 4294901760, %v1164_v49 }
 0x104   :  { %2696 = vmatprep.subr.bf16.mxu1 %v2997_v0 }
 0x105   :  { %v3347_v55 = vsub.f32 %v1164_v49, %v1189_v7  ;;  %v3355_v38 = vpack.c.bf16 %v1192_v31, %v1189_v7 }
 0x107   :  { %2698 = vmatpush3.bf16.msra.mxu1 %v3211_v40  ;;  %v1163_v40 = vld [vmem:[%s3873_s3 + $0x8] sm:$0xff] }
 0x108   :  { %2699 = vmatprep.subr.bf16.mxu1 %v2997_v0 }
 0x10b   :  { %2701 = vmatpush3.bf16.msra.mxu1 %v3221_v51  ;;  %v1183_v51 = vand.u32 4294901760, %v1162_v33 }
 0x10c   :  { %2702 = vmatprep.subr.bf16.mxu1 %v2997_v0 }
 0x10d   :  { %v3343_v58 = vsub.f32 %v1162_v33, %v1183_v51  ;;  %v3363_v33 = vsub.f32 %v1167_v30, %v1198_v46 }
 0x10f   :  { %2704 = vmatpush3.bf16.msra.mxu1 %v2703_v61  ;;  %v1186_v61 = vand.u32 4294901760, %v1163_v40 }
 0x110   :  { %2705 = vmatprep.subr.bf16.mxu1 %v2997_v0 }
 0x111   :  { %v3345_v63 = vsub.f32 %v1163_v40, %v1186_v61  ;;  %v1201_v40 = vand.u32 4294901760, %v1168_v47 }
 0x113   :  { %2707 = vmatpush3.bf16.msra.mxu1 %v2706_v8  ;;  %v1166_v8 = vld [vmem:[%s3873_s3 + $0x20] sm:$0xff]  ;;  %v3366_v25 = vsub.f32 %v1168_v47, %v1201_v40 }
 0x114   :  { %2708 = vmatprep.subr.bf16.mxu1 %v2997_v0 }
 0x117   :  { %2710 = vmatpush3.bf16.msra.mxu1 %v2709_v32  ;;  %v1195_v32 = vand.u32 4294901760, %v1166_v8 }
 0x118   :  { %2711 = vmatprep.subr.bf16.mxu1 %v2997_v0 }
 0x119   :  { %v3359_v26 = vsub.f32 %v1166_v8, %v1195_v32  ;;  %v3379_v8 = vpack.c.bf16 %v1198_v46, %v1195_v32  ;;  %v1283_v46 = vand.u32 4294901760, %v3345_v63 }
 0x11b   :  { %2713 = vmatpush3.bf16.msra.mxu1 %v2712_v52  ;;  %v1169_v52 = vld [vmem:[%s3873_s3 + $0x38] sm:$0xff] }
 0x11c   :  { %2714 = vmatprep.subr.bf16.mxu1 %v2997_v0  ;;  %v1204_v49 = vand.u32 4294901760, %v1169_v52 }
 0x11e   :  { %v3387_v30 = vpack.c.bf16 %v1204_v49, %v1201_v40 }
 0x11f   :  { %2716 = vmatpush3.bf16.msra.mxu1 %v2715_v1  ;;  %v1170_v1 = vld [vmem:[%s3873_s3 + $0x40] sm:$0xff] }
 0x120   :  { %2717 = vmatprep.subr.bf16.mxu1 %v2997_v0 }
 0x122   :  { %2299 = vmatmul.mubr.f32.vlgmr.msra.gmra.mrb[2].mxu1 %v3288_v41 }
 0x123   :  { %2719 = vmatpush3.bf16.msra.mxu1 %v2718_v2  ;;  %2333 = vmatprep.mubr.msk.f32.mxu1 %vm2998_vm1, %v2999_v3  ;;  %v3341_v2 = vpack.c.bf16 %v1186_v61, %v1183_v51  ;;  %v1207_v51 = vand.u32 4294901760, %v1170_v1  ;;  %v1210_v61 = vand.u32 4294901760, %v1171_v48 }
 0x124   :  { %2720 = vmatprep.subr.bf16.mxu1 %v2997_v0 }
 0x125   :  { %2815 = vmatpush3.bf16.msra.mxu0 %v3341_v2  ;;  %v3370_v6 = vsub.f32 %v1170_v1, %v1207_v51  ;;  %v3375_v7 = vsub.f32 %v1171_v48, %v1210_v61  ;;  %v3395_v48 = vpack.c.bf16 %v1210_v61, %v1207_v51  ;;  %v1284_v1 = vsub.f32 %v3345_v63, %v1283_v46 }
 0x126   :  { %2816 = vmatprep.subr.bf16.mxu0 %v2997_v0 }
 0x127   :  { %2722 = vmatpush3.bf16.msra.mxu1 %v2721_v4  ;;  %v3368_v4 = vsub.f32 %v1169_v52, %v1204_v49 }
 0x128   :  { %2723 = vmatprep.subr.bf16.mxu1 %v2997_v0 }
 0x129   :  { %2818 = vmatpush3.bf16.msra.mxu0 %v3355_v38 }
 0x12a   :  { %2819 = vmatprep.subr.bf16.mxu0 %v2997_v0 }
 0x12b   :  { %2725 = vmatpush3.bf16.msra.mxu1 %v2724_v9  ;;  %v2766_v9 = vpack.c.bf16 %v621_v11, %v614_v10  ;;  %v2772_v10 = vpack.c.bf16 %v3903_v22, %v3902_v21  ;;  %v3904_v11 = vand.u32 4294901760, %v3136_v53  ;;  %v3910_v53 = vand.u32 4294901760, %v3181_v16 }
 0x12c   :  { %2726 = vmatprep.subr.bf16.mxu1 %v2997_v0  ;;  %v1290_v21 = vand.u32 4294901760, %v3347_v55  ;;  %v1297_v22 = vand.u32 4294901760, %v3357_v37 }
 0x12d   :  { %2821 = vmatpush3.bf16.msra.mxu0 %v3379_v8 }
 0x12e   :  { %2822 = vmatprep.subr.bf16.mxu0 %v2997_v0 }
 0x12f   :  { %2728 = vmatpush3.bf16.msra.mxu1 %v2727_v23  ;;  %v3900_v23 = vand.u32 4294901760, %v3085_v28  ;;  %v3905_v28 = vand.u32 4294901760, %v3138_v54  ;;  %v3911_v54 = vand.u32 4294901760, %v3183_v17  ;;  %v1176_v17 = vld [vmem:[%s3873_s3 + $0x70] sm:$0xff] }
 0x130   :  { %2729 = vmatprep.subr.bf16.mxu1 %v2997_v0 }
 0x131   :  { %2824 = vmatpush3.bf16.msra.mxu0 %v3387_v30  ;;  %v2784_v31 = vpack.c.bf16 %v3911_v54, %v3910_v53 }
 0x132   :  { %2825 = vmatprep.subr.bf16.mxu0 %v2997_v0 }
 0x133   :  { %2731 = vmatpush3.bf16.msra.mxu1 %v2730_v24  ;;  %v3901_v24 = vand.u32 4294901760, %v3087_v29  ;;  %v2775_v29 = vpack.c.bf16 %v3905_v28, %v3904_v11  ;;  %v1291_v11 = vsub.f32 %v3347_v55, %v1290_v21  ;;  %v1298_v28 = vsub.f32 %v3357_v37, %v1297_v22 }
 0x134   :  { %2732 = vmatprep.subr.bf16.mxu1 %v2997_v0 }
 0x135   :  { %2827 = vmatpush3.bf16.msra.mxu0 %v3395_v48 }
 0x136   :  { %2828 = vmatprep.subr.bf16.mxu0 %v2997_v0 }
 0x137   :  { %2734 = vmatpush3.bf16.msra.mxu1 %v2733_v27  ;;  %v2769_v27 = vpack.c.bf16 %v3901_v24, %v3900_v23 }
 0x138   :  { %2735 = vmatprep.subr.bf16.mxu1 %v2997_v0 }
 0x13b   :  { %2737 = vmatpush3.bf16.msra.mxu1 %v2736_v34 }
 0x13c   :  { %2738 = vmatprep.subr.bf16.mxu1 %v2997_v0 }
 0x13f   :  { %2740 = vmatpush3.bf16.msra.mxu1 %v2739_v35  ;;  %v2781_v35 = vpack.c.bf16 %v3909_v39, %v3908_v36 }
 0x140   :  { %2741 = vmatprep.subr.bf16.mxu1 %v2997_v0 }
 0x142   :  { %2334 = vmatmul.mubr.f32.vlgmr.msra.gmra.mrb[2].mxu1 %v3291_v60  ;;  %v3907_v60 = vand.u32 4294901760, %v3174_v13  ;;  %v3913_v13 = vand.u32 4294901760, %v3189_v20 }
 0x143   :  { %2743 = vmatpush3.bf16.msra.mxu1 %v3105_v43  ;;  %2368 = vmatprep.mubr.msk.f32.mxu1 %vm2998_vm1, %v2999_v3 }
 0x144   :  { %2744 = vmatprep.subr.bf16.mxu1 %v2997_v0 }
 0x147   :  { %2746 = vmatpush3.bf16.msra.mxu1 %v3110_v44 }
 0x148   :  { %2747 = vmatprep.subr.bf16.mxu1 %v2997_v0 }
 0x14b   :  { %2749 = vmatpush3.bf16.msra.mxu1 %v3116_v45 }
 0x14c   :  { %2750 = vmatprep.subr.bf16.mxu1 %v2997_v0 }
 0x14f   :  { %2752 = vmatpush3.bf16.msra.mxu1 %v3127_v50 }
 0x150   :  { %2753 = vmatprep.subr.bf16.mxu1 %v2997_v0 }
 0x153   :  { %2755 = vmatpush3.bf16.msra.mxu1 %v3141_v57 }
 0x154   :  { %2756 = vmatprep.subr.bf16.mxu1 %v2997_v0 }
 0x157   :  { %2758 = vmatpush3.bf16.msra.mxu1 %v3151_v62 }
 0x158   :  { %2759 = vmatprep.subr.bf16.mxu1 %v2997_v0 }
 0x15b   :  { %2761 = vmatpush3.bf16.msra.mxu1 %v3161_v5 }
 0x15c   :  { %2762 = vmatprep.subr.bf16.mxu1 %v2997_v0 }
 0x15f   :  { %2764 = vmatpush3.bf16.msra.mxu1 %v3185_v18 }
 0x160   :  { %2765 = vmatprep.subr.bf16.mxu1 %v2997_v0 }
 0x162   :  { %2369 = vmatmul.mubr.f32.vlgmr.msra.gmra.mrb[2].mxu1 %v603_v59  ;;  %v3906_v59 = vand.u32 4294901760, %v3172_v12  ;;  %v3912_v12 = vand.u32 4294901760, %v3187_v19  ;;  %v1225_v19 = vand.u32 4294901760, %v1176_v17 }
 0x163   :  { %2767 = vmatpush3.bf16.msra.mxu1 %v2766_v9  ;;  %2403 = vmatprep.mubr.msk.f32.mxu1 %vm2998_vm1, %v2999_v3 }
 0x164   :  { %2768 = vmatprep.subr.bf16.mxu1 %v2997_v0  ;;  %v2778_v34 = vpack.c.bf16 %v3907_v60, %v3906_v59  ;;  %v2787_v32 = vpack.c.bf16 %v3913_v13, %v3912_v12  ;;  %v3539_v9 = vsub.f32 %v1176_v17, %v1225_v19  ;;  %v1311_v59 = vand.u32 4294901760, %v3363_v33 }
 0x165   :  { %v1292_v60 = vand.u32 4294901760, %v1291_v11  ;;  %v1325_v12 = vand.u32 4294901760, %v3368_v4 }
 0x166   :  { %v1312_v39 = vsub.f32 %v3363_v33, %v1311_v59 }
 0x167   :  { %2770 = vmatpush3.bf16.msra.mxu1 %v2769_v27  ;;  %v1285_v27 = vand.u32 4294901760, %v1284_v1 }
 0x168   :  { %2771 = vmatprep.subr.bf16.mxu1 %v2997_v0  ;;  %v1313_v54 = vand.u32 4294901760, %v1312_v39 }
 0x16b   :  { %2773 = vmatpush3.bf16.msra.mxu1 %v2772_v10 }
 0x16c   :  { %2774 = vmatprep.subr.bf16.mxu1 %v2997_v0 }
 0x16f   :  { %2776 = vmatpush3.bf16.msra.mxu1 %v2775_v29  ;;  %v1304_v29 = vand.u32 4294901760, %v3359_v26 }
 0x170   :  { %2777 = vmatprep.subr.bf16.mxu1 %v2997_v0 }
 0x171   :  { %v1305_v36 = vsub.f32 %v3359_v26, %v1304_v29 }
 0x173   :  { %2779 = vmatpush3.bf16.msra.mxu1 %v2778_v34  ;;  %v1299_v34 = vand.u32 4294901760, %v1298_v28  ;;  %v1306_v53 = vand.u32 4294901760, %v1305_v36 }
 0x174   :  { %2780 = vmatprep.subr.bf16.mxu1 %v2997_v0 }
 0x175   :  { %v2844_v13 = vpack.c.bf16 %v1313_v54, %v1306_v53 }
 0x177   :  { %2782 = vmatpush3.bf16.msra.mxu1 %v2781_v35  ;;  %v2841_v35 = vpack.c.bf16 %v1299_v34, %v1292_v60 }
 0x178   :  { %2783 = vmatprep.subr.bf16.mxu1 %v2997_v0 }
 0x17b   :  { %2785 = vmatpush3.bf16.msra.mxu1 %v2784_v31  ;;  %v1318_v31 = vand.u32 4294901760, %v3366_v25 }
 0x17c   :  { %2786 = vmatprep.subr.bf16.mxu1 %v2997_v0 }
 0x17f   :  { %2788 = vmatpush3.bf16.msra.mxu1 %v2787_v32  ;;  %v1319_v32 = vsub.f32 %v3366_v25, %v1318_v31 }
 0x180   :  { %2789 = vmatprep.subr.bf16.mxu1 %v2997_v0 }
 0x182   :  { %2404 = vmatmul.mubr.f32.vlgmr.msra.gmra.mrb[2].mxu1 %v3288_v41 }
 0x183   :  { %2791 = vmatpush3.bf16.msra.mxu1 %v3105_v43  ;;  %2438 = vmatprep.mubr.msk.f32.mxu1 %vm2998_vm1, %v2999_v3  ;;  %v1172_v43 = vld [vmem:[%s3873_s3 + $0x50] sm:$0xff] }
 0x184   :  { %2792 = vmatprep.subr.bf16.mxu1 %v2997_v0 }
 0x187   :  { %2794 = vmatpush3.bf16.msra.mxu1 %v3110_v44  ;;  %v1173_v44 = vld [vmem:[%s3873_s3 + $0x58] sm:$0xff] }
 0x188   :  { %2795 = vmatprep.subr.bf16.mxu1 %v2997_v0 }
 0x18b   :  { %2797 = vmatpush3.bf16.msra.mxu1 %v3116_v45  ;;  %v1213_v45 = vand.u32 4294901760, %v1172_v43 }
 0x18c   :  { %2798 = vmatprep.subr.bf16.mxu1 %v2997_v0 }
 0x18d   :  { %v3530_v40 = vsub.f32 %v1172_v43, %v1213_v45  ;;  %v1326_v43 = vsub.f32 %v3368_v4, %v1325_v12 }
 0x18f   :  { %2800 = vmatpush3.bf16.msra.mxu1 %v3127_v50  ;;  %v1216_v50 = vand.u32 4294901760, %v1173_v44 }
 0x190   :  { %2801 = vmatprep.subr.bf16.mxu1 %v2997_v0 }
 0x191   :  { %v3532_v49 = vsub.f32 %v1173_v44, %v1216_v50  ;;  %v1320_v44 = vand.u32 4294901760, %v1319_v32  ;;  %v3894_v32 = vand.u32 4294901760, %v3539_v9 }
 0x193   :  { %2803 = vmatpush3.bf16.msra.mxu1 %v3141_v57  ;;  %v3500_v57 = vpack.c.bf16 %v1216_v50, %v1213_v45  ;;  %v1327_v45 = vand.u32 4294901760, %v1326_v43  ;;  %v1332_v50 = vand.u32 4294901760, %v3370_v6 }
 0x194   :  { %2804 = vmatprep.subr.bf16.mxu1 %v2997_v0 }
 0x195   :  { %2830 = vmatpush3.bf16.msra.mxu0 %v3500_v57 }
 0x196   :  { %2831 = vmatprep.subr.bf16.mxu0 %v2997_v0 }
 0x197   :  { %2806 = vmatpush3.bf16.msra.mxu1 %v3151_v62  ;;  %v1174_v62 = vld [vmem:[%s3873_s3 + $0x60] sm:$0xff] }
 0x198   :  { %2807 = vmatprep.subr.bf16.mxu1 %v2997_v0  ;;  %v1219_v14 = vand.u32 4294901760, %v1174_v62 }
 0x19a   :  { %v3534_v51 = vsub.f32 %v1174_v62, %v1219_v14  ;;  %v3899_v62 = vand.u32 4294901760, %v3375_v7 }
 0x19b   :  { %2809 = vmatpush3.bf16.msra.mxu1 %v3161_v5  ;;  %v1175_v5 = vld [vmem:[%s3873_s3 + $0x68] sm:$0xff] }
 0x19c   :  { %2810 = vmatprep.subr.bf16.mxu1 %v2997_v0  ;;  %v1222_v15 = vand.u32 4294901760, %v1175_v5  ;;  %v3896_v28 = vand.u32 4294901760, %v3534_v51 }
 0x19e   :  { %v3510_v16 = vpack.c.bf16 %v1222_v15, %v1219_v14  ;;  %v3536_v61 = vsub.f32 %v1175_v5, %v1222_v15  ;;  %v2847_v5 = vpack.c.bf16 %v1327_v45, %v1320_v44  ;;  %v1333_v14 = vsub.f32 %v3370_v6, %v1332_v50 }
 0x19f   :  { %2812 = vmatpush3.bf16.msra.mxu1 %v3185_v18  ;;  %v1177_v18 = vld [vmem:[%s3873_s3 + $0x78] sm:$0xff]  ;;  %v1340_v15 = vsub.f32 %v3375_v7, %v3899_v62  ;;  %v1361_v36 = vsub.f32 %v3534_v51, %v3896_v28  ;;  %v1375_v45 = vsub.f32 %v3539_v9, %v3894_v32 }
 0x1a0   :  { %2833 = vmatpush3.bf16.msra.mxu0 %v3510_v16  ;;  %v1228_v20 = vand.u32 4294901760, %v1177_v18  ;;  %v1334_v17 = vand.u32 4294901760, %v1333_v14  ;;  %v3895_v60 = vand.u32 4294901760, %v3536_v61 }
 0x1a1   :  { %2834 = vmatprep.subr.bf16.mxu0 %v2997_v0  ;;  %v1362_v53 = vand.u32 4294901760, %v1361_v36  ;;  %v2874_v36 = vpack.c.bf16 %v3375_v7, %v3370_v6  ;;  %v3919_v6 = vand.u32 4294901760, %v3539_v9 }
 0x1a2   :  { %2439 = vmatmul.mubr.f32.vlgmr.msra.gmra.mrb[2].mxu1 %v3288_v41  ;;  %v1276_v41 = vand.u32 4294901760, %v3343_v58  ;;  %v3522_v47 = vpack.c.bf16 %v1228_v20, %v1225_v19  ;;  %v3541_v23 = vsub.f32 %v1177_v18, %v1228_v20  ;;  %v1341_v18 = vand.u32 4294901760, %v1340_v15 }
 0x1a3   :  { %v3898_v19 = vand.u32 4294901760, %v3530_v40  ;;  %v3897_v20 = vand.u32 4294901760, %v3532_v49  ;;  %v1368_v39 = vsub.f32 %v3536_v61, %v3895_v60  ;;  %v1376_v15 = vand.u32 4294901760, %v1375_v45 }
 0x1a4   :  { %v1277_v52 = vsub.f32 %v3343_v58, %v1276_v41  ;;  %2836 = vmatpush3.bf16.msra.mxu0 %v3522_v47  ;;  %v3893_v43 = vand.u32 4294901760, %v3541_v23  ;;  %v518_v45 = vsub.s32 1, %v3277_v42 }
 0x1a5   :  { %2837 = vmatprep.subr.bf16.mxu0 %v2997_v0  ;;  %v1347_v1 = vsub.f32 %v3530_v40, %v3898_v19  ;;  %v1369_v54 = vand.u32 4294901760, %v1368_v39  ;;  %v2877_v39 = vpack.c.bf16 %v3532_v49, %v3530_v40 }
 0x1a6   :  { %v1278_v24 = vand.u32 4294901760, %v1277_v52  ;;  %v2850_v52 = vpack.c.bf16 %v1341_v18, %v1334_v17  ;;  %v1382_v14 = vsub.f32 %v3541_v23, %v3893_v43 }
 0x1a7   :  { %v2856_v44 = vpack.c.bf16 %v1369_v54, %v1362_v53  ;;  %v2880_v53 = vpack.c.bf16 %v3536_v61, %v3534_v51  ;;  %v2883_v54 = vpack.c.bf16 %v3541_v23, %v3539_v9 }
 0x1a8   :  { %v3546_v10 = vpack.c.bf16 %v1285_v27, %v1278_v24  ;;  %v1354_v24 = vsub.f32 %v3532_v49, %v3897_v20  ;;  %v1348_v27 = vand.u32 4294901760, %v1347_v1  ;;  %v1383_v17 = vand.u32 4294901760, %v1382_v14 }
 0x1a9   :  { %v2862_v1 = vpack.c.bf16 %v3345_v63, %v3343_v58  ;;  %v519_v14 = vrot.slane %v3283_v56, %v518_v45  ;;  %v2916_v58 = vpack.c.bf16 %v1311_v59, %v1304_v29  ;;  %v1826_v29 = vld [vmem:[%s3875_s5 + $0x8] sm:$0xff]  ;;  %v1829_v59 = vld [vmem:[%s3875_s5 + $0x20] sm:$0xff] }
 0x1aa   :  { %v1355_v11 = vand.u32 4294901760, %v1354_v24  ;;  %v2859_v18 = vpack.c.bf16 %v1383_v17, %v1376_v15  ;;  %v2865_v24 = vpack.c.bf16 %v3357_v37, %v3347_v55  ;;  %v2919_v37 = vpack.c.bf16 %v1325_v12, %v1318_v31  ;;  %v1828_v31 = vld [vmem:[%s3875_s5 + $0x18] sm:$0xff]  ;;  %v1831_v12 = vld [vmem:[%s3875_s5 + $0x30] sm:$0xff]  ;;  %v1837_v45 = vld [vmem:[%s3875_s5 + $0x60] sm:$0xf] }
 0x1ab   :  { %v3914_v55 = vand.u32 4294901760, %v3375_v7  ;;  %v3920_v7 = vand.u32 4294901760, %v3541_v23 }
 0x1ac   :  { %v2853_v34 = vpack.c.bf16 %v1355_v11, %v1348_v27  ;;  %v2868_v27 = vpack.c.bf16 %v3363_v33, %v3359_v26  ;;  %v2871_v11 = vpack.c.bf16 %v3368_v4, %v3366_v25  ;;  %v3915_v26 = vand.u32 4294901760, %v3530_v40 }
 0x1ad   :  { %v2922_v63 = vpack.c.bf16 %v3914_v55, %v1332_v50  ;;  %v3916_v33 = vand.u32 4294901760, %v3532_v49  ;;  %v3917_v25 = vand.u32 4294901760, %v3534_v51  ;;  %v3918_v4 = vand.u32 4294901760, %v3536_v61  ;;  %v1830_v50 = vld [vmem:[%s3875_s5 + $0x28] sm:$0xff] }
 0x1ae   :  { %v1180_v40 = vsub.s32 2, %v3277_v42 }
 0x275   :  { %v1157_v15 = vpop.f32.mrb[2].mxu1 }
 0x276   :  { %v2959_v17 = vadd.f32 %v1157_v15, %v519_v14  ;;  %v2440_v43 = vpop.f32.mrb[3].mxu1  ;;  %v1836_v15 = vld [vmem:[%s3875_s5 + $0x58] sm:$0xff] }
 0x277   :  { %v1846_v43 = vld [vmem:[%s3874_s6 + $0x40] sm:$0xff] }
 0x278   :  { %v1161_v32 = vmax.f32 %v2959_v17, 0.0 }
 0x27a   :  { %v3620_v60 = vand.u32 4294901760, %v1161_v32 }
 0x27c   :  { %v3623_v28 = vsub.f32 %v1161_v32, %v3620_v60  ;;  %v1845_v32 = vld [vmem:[%s3874_s6 + $0x38] sm:$0xff] }
 0x27e   :  { %v1265_v20 = vand.u32 4294901760, %v3623_v28 }
 0x280   :  { %v1266_v19 = vsub.f32 %v3623_v28, %v1265_v20 }
 0x282   :  { %v1267_v62 = vand.u32 4294901760, %v1266_v19  ;;  %v1842_v19 = vld [vmem:[%s3874_s6 + $0x20] sm:$0xff] }
 0x284   :  { %2474 = vmatmul.mubr.f32.vlgmr.msra.gmra.mrb[2].mxu0 %v1267_v62  ;;  %v1839_v62 = vld [vmem:[%s3874_s6 + $0x8] sm:$0xff] }
 0x285   :  { %2839 = vmatpush3.bf16.msra.mxu0 %v3546_v10  ;;  %2508 = vmatprep.mubr.msk.f32.mxu0 %vm2998_vm1, %v2999_v3  ;;  %v1838_v10 = vld [vmem:[%s3874_s6] sm:$0xff] }
 0x286   :  { %2840 = vmatprep.subr.bf16.mxu0 %v2997_v0 }
 0x289   :  { %2842 = vmatpush3.bf16.msra.mxu0 %v2841_v35  ;;  %v1840_v35 = vld [vmem:[%s3874_s6 + $0x10] sm:$0xff] }
 0x28a   :  { %2843 = vmatprep.subr.bf16.mxu0 %v2997_v0 }
 0x28d   :  { %2845 = vmatpush3.bf16.msra.mxu0 %v2844_v13  ;;  %v3000_v13 = vmov 0  }
 0x28e   :  { %2846 = vmatprep.subr.bf16.mxu0 %v2997_v0  ;;  %2993 = vset.pattern.permute.xlu0 %v3000_v13 }
 0x28f   :  { %1853 = vperm.xlu0 %2993, %v1838_v10   ;;  %2994 = vset.pattern.permute.xlu1 %v3000_v13 }
 0x290   :  { %1863 = vperm.xlu1 %2994, %v1840_v35  }
 0x291   :  { %2848 = vmatpush3.bf16.msra.mxu0 %v2847_v5  ;;  %v1841_v5 = vld [vmem:[%s3874_s6 + $0x18] sm:$0xff] }
 0x292   :  { %2849 = vmatprep.subr.bf16.mxu0 %v2997_v0 }
 0x293   :  { %1858 = vperm.xlu0 %2993, %v1839_v62  }
 0x294   :  { %1868 = vperm.xlu1 %2994, %v1841_v5  }
 0x295   :  { %2851 = vmatpush3.bf16.msra.mxu0 %v2850_v52  ;;  %v1843_v52 = vld [vmem:[%s3874_s6 + $0x28] sm:$0xff] }
 0x296   :  { %2852 = vmatprep.subr.bf16.mxu0 %v2997_v0 }
 0x297   :  { %1873 = vperm.xlu0 %2993, %v1842_v19  }
 0x298   :  { %1878 = vperm.xlu1 %2994, %v1843_v52  }
 0x299   :  { %2854 = vmatpush3.bf16.msra.mxu0 %v2853_v34  ;;  %v1844_v34 = vld [vmem:[%s3874_s6 + $0x30] sm:$0xff] }
 0x29a   :  { %2855 = vmatprep.subr.bf16.mxu0 %v2997_v0 }
 0x29b   :  { %1883 = vperm.xlu0 %2993, %v1844_v34   ;;  %v3921_v34 = vsub.s32 0, %v3277_v42 }
 0x29c   :  { %1888 = vperm.xlu1 %2994, %v1845_v32  }
 0x29d   :  { %2857 = vmatpush3.bf16.msra.mxu0 %v2856_v44  ;;  %v1847_v44 = vld [vmem:[%s3874_s6 + $0x48] sm:$0xff] }
 0x29e   :  { %2858 = vmatprep.subr.bf16.mxu0 %v2997_v0 }
 0x29f   :  { %1893 = vperm.xlu0 %2993, %v1846_v43  }
 0x2a0   :  { %1898 = vperm.xlu1 %2994, %v1847_v44  }
 0x2a1   :  { %2860 = vmatpush3.bf16.msra.mxu0 %v2859_v18  ;;  %v1848_v18 = vld [vmem:[%s3874_s6 + $0x50] sm:$0xff] }
 0x2a2   :  { %2861 = vmatprep.subr.bf16.mxu0 %v2997_v0 }
 0x2a3   :  { %1903 = vperm.xlu0 %2993, %v1848_v18  }
 0x2a4   :  { %2509 = vmatmul.mubr.f32.vlgmr.msra.gmra.mrb[2].mxu0 %v3620_v60 }
 0x2a5   :  { %2863 = vmatpush3.bf16.msra.mxu0 %v2862_v1  ;;  %2543 = vmatprep.mubr.msk.f32.mxu0 %vm2998_vm1, %v2999_v3  ;;  %v1849_v1 = vld [vmem:[%s3874_s6 + $0x58] sm:$0xff] }
 0x2a6   :  { %2864 = vmatprep.subr.bf16.mxu0 %v2997_v0  ;;  %1908 = vperm.xlu1 %2994, %v1849_v1  }
 0x2a9   :  { %2866 = vmatpush3.bf16.msra.mxu0 %v2865_v24  ;;  %v1850_v24 = vld [vmem:[%s3874_s6 + $0x60] sm:$0xf] }
 0x2aa   :  { %2867 = vmatprep.subr.bf16.mxu0 %v2997_v0  ;;  %1913 = vperm.xlu0 %2993, %v1850_v24  }
 0x2ad   :  { %2869 = vmatpush3.bf16.msra.mxu0 %v2868_v27  ;;  %v2910_v27 = vpack.c.bf16 %v1283_v46, %v1276_v41  ;;  %v2925_v41 = vpack.c.bf16 %v3916_v33, %v3915_v26  ;;  %v2928_v46 = vpack.c.bf16 %v3918_v4, %v3917_v25 }
 0x2ae   :  { %2870 = vmatprep.subr.bf16.mxu0 %v2997_v0 }
 0x2b1   :  { %2872 = vmatpush3.bf16.msra.mxu0 %v2871_v11  ;;  %v2913_v11 = vpack.c.bf16 %v1297_v22, %v1290_v21  ;;  %v2931_v21 = vpack.c.bf16 %v3920_v7, %v3919_v6  ;;  %v1825_v22 = vld [vmem:[%s3875_s5] sm:$0xff] }
 0x2b2   :  { %2873 = vmatprep.subr.bf16.mxu0 %v2997_v0 }
 0x2b5   :  { %2875 = vmatpush3.bf16.msra.mxu0 %v2874_v36 }
 0x2b6   :  { %2876 = vmatprep.subr.bf16.mxu0 %v2997_v0 }
 0x2b9   :  { %2878 = vmatpush3.bf16.msra.mxu0 %v2877_v39 }
 0x2ba   :  { %2879 = vmatprep.subr.bf16.mxu0 %v2997_v0 }
 0x2bd   :  { %2881 = vmatpush3.bf16.msra.mxu0 %v2880_v53  ;;  %v1834_v53 = vld [vmem:[%s3875_s5 + $0x48] sm:$0xff] }
 0x2be   :  { %2882 = vmatprep.subr.bf16.mxu0 %v2997_v0 }
 0x2c1   :  { %2884 = vmatpush3.bf16.msra.mxu0 %v2883_v54 }
 0x2c2   :  { %2885 = vmatprep.subr.bf16.mxu0 %v2997_v0 }
 0x2c4   :  { %2544 = vmatmul.mubr.f32.vlgmr.msra.gmra.mrb[2].mxu0 %v3623_v28  ;;  %v1832_v28 = vld [vmem:[%s3875_s5 + $0x38] sm:$0xff] }
 0x2c5   :  { %2887 = vmatpush3.bf16.msra.mxu0 %v3341_v2  ;;  %2578 = vmatprep.mubr.msk.f32.mxu0 %vm2998_vm1, %v2999_v3 }
 0x2c6   :  { %2888 = vmatprep.subr.bf16.mxu0 %v2997_v0 }
 0x2c9   :  { %2890 = vmatpush3.bf16.msra.mxu0 %v3355_v38 }
 0x2ca   :  { %2891 = vmatprep.subr.bf16.mxu0 %v2997_v0 }
 0x2cd   :  { %2893 = vmatpush3.bf16.msra.mxu0 %v3379_v8 }
 0x2ce   :  { %2894 = vmatprep.subr.bf16.mxu0 %v2997_v0 }
 0x2d1   :  { %2896 = vmatpush3.bf16.msra.mxu0 %v3387_v30 }
 0x2d2   :  { %2897 = vmatprep.subr.bf16.mxu0 %v2997_v0 }
 0x2d5   :  { %2899 = vmatpush3.bf16.msra.mxu0 %v3395_v48 }
 0x2d6   :  { %2900 = vmatprep.subr.bf16.mxu0 %v2997_v0 }
 0x2d9   :  { %2902 = vmatpush3.bf16.msra.mxu0 %v3500_v57 }
 0x2da   :  { %2903 = vmatprep.subr.bf16.mxu0 %v2997_v0 }
 0x2dd   :  { %2905 = vmatpush3.bf16.msra.mxu0 %v3510_v16 }
 0x2de   :  { %2906 = vmatprep.subr.bf16.mxu0 %v2997_v0 }
 0x2e1   :  { %2908 = vmatpush3.bf16.msra.mxu0 %v3522_v47 }
 0x2e2   :  { %2909 = vmatprep.subr.bf16.mxu0 %v2997_v0 }
 0x2e4   :  { %2579 = vmatmul.mubr.f32.vlgmr.msra.gmra.mrb[2].mxu0 %v1265_v20  ;;  %v1833_v20 = vld [vmem:[%s3875_s5 + $0x40] sm:$0xff] }
 0x2e5   :  { %2911 = vmatpush3.bf16.msra.mxu0 %v2910_v27  ;;  %2613 = vmatprep.mubr.msk.f32.mxu0 %vm2998_vm1, %v2999_v3 }
 0x2e6   :  { %2912 = vmatprep.subr.bf16.mxu0 %v2997_v0 }
 0x2e9   :  { %2914 = vmatpush3.bf16.msra.mxu0 %v2913_v11 }
 0x2ea   :  { %2915 = vmatprep.subr.bf16.mxu0 %v2997_v0 }
 0x2ed   :  { %2917 = vmatpush3.bf16.msra.mxu0 %v2916_v58 }
 0x2ee   :  { %2918 = vmatprep.subr.bf16.mxu0 %v2997_v0 }
 0x2f1   :  { %2920 = vmatpush3.bf16.msra.mxu0 %v2919_v37 }
 0x2f2   :  { %2921 = vmatprep.subr.bf16.mxu0 %v2997_v0 }
 0x2f5   :  { %2923 = vmatpush3.bf16.msra.mxu0 %v2922_v63 }
 0x2f6   :  { %2924 = vmatprep.subr.bf16.mxu0 %v2997_v0 }
 0x2f9   :  { %2926 = vmatpush3.bf16.msra.mxu0 %v2925_v41 }
 0x2fa   :  { %2927 = vmatprep.subr.bf16.mxu0 %v2997_v0 }
 0x2fd   :  { %2929 = vmatpush3.bf16.msra.mxu0 %v2928_v46 }
 0x2fe   :  { %2930 = vmatprep.subr.bf16.mxu0 %v2997_v0 }
 0x301   :  { %2932 = vmatpush3.bf16.msra.mxu0 %v2931_v21 }
 0x302   :  { %2933 = vmatprep.subr.bf16.mxu0 %v2997_v0 }
 0x304   :  { %2614 = vmatmul.mubr.f32.vlgmr.msra.gmra.mrb[2].mxu0 %v3620_v60 }
 0x305   :  { %2935 = vmatpush3.bf16.msra.mxu0 %v3341_v2  ;;  %2648 = vmatprep.mubr.msk.f32.mxu0 %vm2998_vm1, %v2999_v3 }
 0x306   :  { %2936 = vmatprep.subr.bf16.mxu0 %v2997_v0 }
 0x309   :  { %2938 = vmatpush3.bf16.msra.mxu0 %v3355_v38 }
 0x30a   :  { %2939 = vmatprep.subr.bf16.mxu0 %v2997_v0 }
 0x30d   :  { %2941 = vmatpush3.bf16.msra.mxu0 %v3379_v8 }
 0x30e   :  { %2942 = vmatprep.subr.bf16.mxu0 %v2997_v0  ;;  %v1854_v3 = vpop.permute.xlu0 %1853 }
 0x30f   :  { %v1864_v38 = vpop.permute.xlu1 %1863  ;;  %v1916_v36 = vmul.f32 %v1854_v3, %v1825_v22 }
 0x311   :  { %2944 = vmatpush3.bf16.msra.mxu0 %v3387_v30 }
 0x312   :  { %2945 = vmatprep.subr.bf16.mxu0 %v2997_v0  ;;  %v1859_v2 = vpop.permute.xlu0 %1858 }
 0x313   :  { %v1869_v8 = vpop.permute.xlu1 %1868  ;;  %v1917_v10 = vmul.f32 %v1859_v2, %v1826_v29 }
 0x314   :  { %v1919_v13 = vmul.f32 %v1869_v8, %v1828_v31 }
 0x315   :  { %2947 = vmatpush3.bf16.msra.mxu0 %v3395_v48 }
 0x316   :  { %2948 = vmatprep.subr.bf16.mxu0 %v2997_v0  ;;  %v1874_v30 = vpop.permute.xlu0 %1873 }
 0x317   :  { %v1879_v48 = vpop.permute.xlu1 %1878  ;;  %v1920_v35 = vmul.f32 %v1874_v30, %v1829_v59 }
 0x318   :  { %v1921_v62 = vmul.f32 %v1879_v48, %v1830_v50 }
 0x319   :  { %2950 = vmatpush3.bf16.msra.mxu0 %v3500_v57  ;;  %v1181_v57 = vrot.slane %v3283_v56, %v1180_v40  ;;  %v1827_v56 = vld [vmem:[%s3875_s5 + $0x10] sm:$0xff] }
 0x31a   :  { %2951 = vmatprep.subr.bf16.mxu0 %v2997_v0  ;;  %v1884_v49 = vpop.permute.xlu0 %1883  ;;  %v1918_v39 = vmul.f32 %v1864_v38, %v1827_v56 }
 0x31b   :  { %v1889_v51 = vpop.permute.xlu1 %1888  ;;  %v1922_v5 = vmul.f32 %v1884_v49, %v1831_v12 }
 0x31c   :  { %v1923_v52 = vmul.f32 %v1889_v51, %v1832_v28 }
 0x31d   :  { %2953 = vmatpush3.bf16.msra.mxu0 %v3510_v16 }
 0x31e   :  { %2954 = vmatprep.subr.bf16.mxu0 %v2997_v0  ;;  %v1894_v61 = vpop.permute.xlu0 %1893 }
 0x31f   :  { %v1899_v23 = vpop.permute.xlu1 %1898  ;;  %v1924_v19 = vmul.f32 %v1894_v61, %v1833_v20 }
 0x320   :  { %v1925_v44 = vmul.f32 %v1899_v23, %v1834_v53 }
 0x321   :  { %2956 = vmatpush3.bf16.msra.mxu0 %v3522_v47 }
 0x322   :  { %v1904_v47 = vpop.permute.xlu0 %1903 }
 0x324   :  { %2649 = vmatmul.mubr.f32.vlgmr.msra.gmra.mrb[2].mxu0 %v3620_v60  ;;  %v1835_v60 = vld [vmem:[%s3875_s5 + $0x50] sm:$0xff] }
 0x325   :  { %v1909_v14 = vpop.permute.xlu1 %1908  ;;  %v1926_v43 = vmul.f32 %v1904_v47, %v1835_v60 }
 0x326   :  { %v1927_v1 = vmul.f32 %v1909_v14, %v1836_v15 }
 0x329   :  { %v1914_v54 = vpop.permute.xlu0 %1913 }
 0x32a   :  { %v1928_v18 = vmul.f32 %v1914_v54, %v1837_v45 }
 0x3f7   :  { %v1819_v16 = vpop.f32.mrb[2].mxu0 }
 0x3f8   :  { %v2960_v9 = vadd.f32 %v1819_v16, %v1181_v57  ;;  %v2650_v0 = vpop.f32.mrb[3].mxu0 }
 0x3fa   :  { %2995 = vtanh.f32 %v2960_v9 }
 0x404   :  { %v2996_v17 = vpop.eup %2995 }
 0x405   :  { %1824 = vst [vmem:[%s3876_s7] sm:$0xff] %v2996_v17  ;;  %v1932_v32 = vrot.slane %v2996_v17, %v3921_v34 }
 0x407   :  { %v1933_v24 = vadd.f32 %v1932_v32, %v1916_v36  ;;  %v1934_v27 = vadd.f32 %v1932_v32, %v1917_v10  ;;  %v1935_v11 = vadd.f32 %v1932_v32, %v1918_v39  ;;  %v1936_v58 = vadd.f32 %v1932_v32, %v1919_v13 }
 0x408   :  { %v1937_v37 = vadd.f32 %v1932_v32, %v1920_v35  ;;  %v1938_v55 = vadd.f32 %v1932_v32, %v1921_v62  ;;  %v1939_v63 = vadd.f32 %v1932_v32, %v1922_v5  ;;  %v1940_v26 = vadd.f32 %v1932_v32, %v1923_v52 }
 0x409   :  { %v1941_v33 = vadd.f32 %v1932_v32, %v1924_v19  ;;  %v1942_v41 = vadd.f32 %v1932_v32, %v1925_v44  ;;  %v1943_v25 = vadd.f32 %v1932_v32, %v1926_v43  ;;  %v1944_v4 = vadd.f32 %v1932_v32, %v1927_v1  ;;  %1946 = vst [vmem:[%s3877_s8] sm:$0xff] %v1933_v24 }
 0x40a   :  { %1947 = vst [vmem:[%s3877_s8 + $0x8] sm:$0xff] %v1934_v27  ;;  %1948 = vst [vmem:[%s3877_s8 + $0x10] sm:$0xff] %v1935_v11  ;;  %v1945_v42 = vadd.f32 %v1932_v32, %v1928_v18 }
 0x40b   :  { %1949 = vst [vmem:[%s3877_s8 + $0x18] sm:$0xff] %v1936_v58  ;;  %1950 = vst [vmem:[%s3877_s8 + $0x20] sm:$0xff] %v1937_v37 }
 0x40c   :  { %1951 = vst [vmem:[%s3877_s8 + $0x28] sm:$0xff] %v1938_v55  ;;  %1952 = vst [vmem:[%s3877_s8 + $0x30] sm:$0xff] %v1939_v63 }
 0x40d   :  { %1953 = vst [vmem:[%s3877_s8 + $0x38] sm:$0xff] %v1940_v26  ;;  %1954 = vst [vmem:[%s3877_s8 + $0x40] sm:$0xff] %v1941_v33 }
 0x40e   :  { %1955 = vst [vmem:[%s3877_s8 + $0x48] sm:$0xff] %v1942_v41  ;;  %1956 = vst [vmem:[%s3877_s8 + $0x50] sm:$0xff] %v1943_v25 }
 0x40f   :  { %1957 = vst [vmem:[%s3877_s8 + $0x58] sm:$0xff] %v1944_v4  ;;  %1958 = vst [vmem:[%s3877_s8 + $0x60] sm:$0xf] %v1945_v42 }

</bundles_post_ra>
